<compile_context>
chip_gen: v7x
topology: tpu7x:2x2x1
jax: 0.10.0
libtpu: 0.0.40
codegen_flags: <defaults>
</compile_context>

<pallas_src>
import jax
import jax.numpy as jnp
from jax import lax
from jax.experimental import pallas as pl
from jax.experimental.pallas import tpu as pltpu


def _complex_in_kernel(xr_ref, xi_ref, c_ref, s_ref, out_r_ref, out_i_ref):
    """Complex input: Gauss 3-matmul, accumulate into VMEM-resident outputs."""
    k = pl.program_id(2)

    @pl.when(k == 0)
    def _():
        out_r_ref[...] = jnp.zeros_like(out_r_ref)
        out_i_ref[...] = jnp.zeros_like(out_i_ref)

    xr = xr_ref[...]
    xi = xi_ref[...]
    c = c_ref[...]
    s = s_ref[...]

    # t1 = (xr+xi)@C, t2 = xr@(S-C), t3 = xi@(S+C)
    # out_r = t1 - t3 = xr@C - xi@S ;  out_i = t1 + t2 = xr@S + xi@C
    t1 = jnp.dot(xr + xi, c, preferred_element_type=jnp.float32)
    t2 = jnp.dot(xr, s - c, preferred_element_type=jnp.float32)
    t3 = jnp.dot(xi, s + c, preferred_element_type=jnp.float32)

    out_r_ref[...] += t1 - t3
    out_i_ref[...] += t1 + t2


def _real_in_kernel(x_ref, c_ref, s_ref, out_r_ref, out_i_ref):
    """Real input fast path: out_r = x@C, out_i = x@S."""
    k = pl.program_id(2)

    @pl.when(k == 0)
    def _():
        out_r_ref[...] = jnp.zeros_like(out_r_ref)
        out_i_ref[...] = jnp.zeros_like(out_i_ref)

    x = x_ref[...]
    out_r_ref[...] += jnp.dot(x, c_ref[...], preferred_element_type=jnp.float32)
    out_i_ref[...] += jnp.dot(x, s_ref[...], preferred_element_type=jnp.float32)


def _round_up(x: int, m: int) -> int:
    return (x + m - 1) // m * m


def complex_linear(x: jax.Array, theta: jax.Array, *, use_bf16: bool = True) -> jax.Array:
    """Pallas-backed ComplexLinear.forward: x @ (cos(theta) + 1j*sin(theta)).

    x:     (..., in_features), real or complex.
    theta: (in_features, out_features), float32.
    use_bf16: run the MXU in bf16 (f32 accumulation).  Set False for an exact
              f32 operand path.
    Returns complex64 of shape (..., out_features).
    """
    in_features, out_features = theta.shape
    *batch, K = x.shape
    assert K == in_features, "last dim of input must equal in_features"

    M = 1
    for b in batch:
        M *= b
    N = out_features

    op_dtype = jnp.bfloat16 if use_bf16 else jnp.float32
    op_bytes = jnp.dtype(op_dtype).itemsize
    is_complex = jnp.issubdtype(x.dtype, jnp.complexfloating)

    # Precompute the weight planes once (EUP work pulled out of the kernel).
    theta_f32 = theta.astype(jnp.float32)
    c_plane = jnp.cos(theta_f32).astype(op_dtype)
    s_plane = jnp.sin(theta_f32).astype(op_dtype)

    if is_complex:
        x_planes = [jnp.real(x).astype(op_dtype).reshape(M, K),
                    jnp.imag(x).astype(op_dtype).reshape(M, K)]
    else:
        x_planes = [x.astype(op_dtype).reshape(M, K)]

    # ---- Tile selection ----------------------------------------------------
    # Large lane-dense tiles; keep K in a single block when it is small enough
    # (no reduction grid axis, no padding-to-128 waste along K).
    tm = min(512, _round_up(M, 8))
    tn = min(512, _round_up(N, 128))
    Kp = _round_up(K, 8)
    if Kp <= 1024:
        tk = Kp                      # full-K block (equals full array dim)
    else:
        tk = 512
        Kp = _round_up(K, tk)
    Mp = _round_up(M, tm)
    Np = _round_up(N, tn)

    if (Mp, Kp) != (M, K):
        x_planes = [jnp.pad(p, ((0, Mp - M), (0, Kp - K))) for p in x_planes]
    if (Kp, Np) != (K, N):
        # Zero-padded weight planes: padded K rows and padded N cols contribute
        # exactly zero, independent of the x padding.
        c_plane = jnp.pad(c_plane, ((0, Kp - K), (0, Np - N)))
        s_plane = jnp.pad(s_plane, ((0, Kp - K), (0, Np - N)))

    grid = (Mp // tm, Np // tn, Kp // tk)

    # ---- Specs / compiler params / cost ------------------------------------
    x_spec = pl.BlockSpec((tm, tk), lambda i, j, k: (i, k))
    w_spec = pl.BlockSpec((tk, tn), lambda i, j, k: (k, j))
    out_spec = pl.BlockSpec((tm, tn), lambda i, j, k: (i, j))
    in_specs = [x_spec] * len(x_planes) + [w_spec, w_spec]

    n_mm = 3 if is_complex else 2
    cost = pl.CostEstimate(
        flops=n_mm * 2 * Mp * Kp * Np,
        transcendentals=0,
        bytes_accessed=(len(x_planes) * Mp * Kp * op_bytes * grid[1]   # x re-streamed per N tile
                        + 2 * Kp * Np * op_bytes * grid[0]             # C,S re-streamed per M tile
                        + 2 * Mp * Np * 4),                            # outputs written once
    )

    # Double-buffered VMEM footprint estimate; only raise the scoped limit when
    # the tiles actually need it (keeps small shapes identical to the default
    # config and stays within v7x's 64 MiB physical VMEM).
    in_bytes = (len(x_planes) * tm * tk + 2 * tk * tn) * op_bytes
    out_bytes = 2 * tm * tn * 4
    vmem_needed = 2 * (in_bytes + out_bytes)
    cp_kwargs = dict(dimension_semantics=("parallel", "parallel", "arbitrary"))
    if vmem_needed > 12 * 1024 * 1024:
        cp_kwargs["vmem_limit_bytes"] = int(min(60 * 1024 * 1024, 2 * vmem_needed))

    kernel = _complex_in_kernel if is_complex else _real_in_kernel

    out_r, out_i = pl.pallas_call(
        kernel,
        out_shape=(jax.ShapeDtypeStruct((Mp, Np), jnp.float32),
                   jax.ShapeDtypeStruct((Mp, Np), jnp.float32)),
        grid_spec=pltpu.PrefetchScalarGridSpec(
            num_scalar_prefetch=0,
            grid=grid,
            in_specs=in_specs,
            out_specs=[out_spec, out_spec],
        ),
        compiler_params=pltpu.CompilerParams(**cp_kwargs),
        cost_estimate=cost,
    )(*x_planes, c_plane, s_plane)

    out = lax.complex(out_r[:M, :N], out_i[:M, :N])
    return out.reshape(*batch, N)


def _rel_err(a, b):
    return jnp.linalg.norm(jnp.abs(a - b)) / jnp.linalg.norm(jnp.abs(b))


if __name__ == "__main__":
    key = jax.random.PRNGKey(0)
    k_theta, k_real, k_imag = jax.random.split(key, 3)

    batch, seq, in_features, out_features = 2, 8, 32, 32

    # Matches nn.Parameter(torch.rand(in, out) * 2*pi).
    theta = jax.random.uniform(
        k_theta, (in_features, out_features), dtype=jnp.float32) * (2.0 * jnp.pi)

    xr = jax.random.normal(k_real, (batch, seq, in_features), dtype=jnp.float32)
    xi = jax.random.normal(k_imag, (batch, seq, in_features), dtype=jnp.float32)
    x = lax.complex(xr, xi)  # complex64 input

    # Reference: fea = x @ (cos(theta) + 1j*sin(theta))
    mt = (jnp.cos(theta) + 1j * jnp.sin(theta)).astype(jnp.complex64)
    y_ref = jnp.matmul(x, mt)

    # Default bf16-MXU path (complex input).
    y = jax.block_until_ready(complex_linear(x, theta))
    assert y.shape == (batch, seq, out_features)
    assert y.dtype == jnp.complex64
    assert float(_rel_err(y, y_ref)) < 2e-2

    # f32 fallback path (same tolerance as original test).
    y32 = jax.block_until_ready(complex_linear(x, theta, use_bf16=False))
    assert bool(jnp.allclose(y32, y_ref, rtol=1e-2, atol=1e-2))

    # Real-input fast path.
    yr = jax.block_until_ready(complex_linear(xr, theta))
    yr_ref = jnp.matmul(xr.astype(jnp.complex64), mt)
    assert yr.dtype == jnp.complex64
    assert float(_rel_err(yr, yr_ref)) < 2e-2

    print("KERNEL_OK")
</pallas_src>

<mosaic_0001>
module attributes {stable_mosaic.version = 11 : i64} {
  func.func @_complex_in_kernel(%arg0: i32, %arg1: i32, %arg2: i32, %arg3: memref<16x32xbf16, #tpu.memory_space<vmem>>, %arg4: memref<16x32xbf16, #tpu.memory_space<vmem>>, %arg5: memref<32x128xbf16, #tpu.memory_space<vmem>>, %arg6: memref<32x128xbf16, #tpu.memory_space<vmem>>, %arg7: memref<16x128xf32, #tpu.memory_space<vmem>>, %arg8: memref<16x128xf32, #tpu.memory_space<vmem>>) attributes {dimension_semantics = [#tpu.dimension_semantics<parallel>, #tpu.dimension_semantics<parallel>, #tpu.dimension_semantics<arbitrary>], iteration_bounds = array<i64: 1, 1, 1>, scalar_prefetch = 0 : i64, scratch_operands = 0 : i64, tpu.core_type = #tpu.core_type<tc>, window_params = [{transform_indices = @transform_0, window_bounds = array<i64: 16, 32>}, {transform_indices = @transform_1, window_bounds = array<i64: 16, 32>}, {transform_indices = @transform_2, window_bounds = array<i64: 32, 128>}, {transform_indices = @transform_3, window_bounds = array<i64: 32, 128>}, {transform_indices = @transform_4, window_bounds = array<i64: 16, 128>}, {transform_indices = @transform_5, window_bounds = array<i64: 16, 128>}]} {
    %c0_i32 = arith.constant 0 : i32
    %0 = arith.cmpi eq, %arg2, %c0_i32 : i32
    %1 = arith.extui %0 : i1 to i32
    %c0_i32_0 = arith.constant 0 : i32
    %2 = arith.cmpi ne, %1, %c0_i32_0 : i32
    scf.if %2 {
      %cst_18 = arith.constant 0.000000e+00 : f32
      %21 = vector.broadcast %cst_18 : f32 to vector<16x128xf32>
      %c0_19 = arith.constant 0 : index
      %c0_20 = arith.constant 0 : index
      %22 = vector.load %arg7[%c0_19, %c0_20] : memref<16x128xf32, #tpu.memory_space<vmem>>, vector<16x128xf32>
      tpu.vector_store %arg7[%c0_19, %c0_20], %21 {strides = array<i32>} : memref<16x128xf32, #tpu.memory_space<vmem>>, vector<16x128xf32>,
      %cst_21 = arith.constant 0.000000e+00 : f32
      %23 = vector.broadcast %cst_21 : f32 to vector<16x128xf32>
      %c0_22 = arith.constant 0 : index
      %c0_23 = arith.constant 0 : index
      %24 = vector.load %arg8[%c0_22, %c0_23] : memref<16x128xf32, #tpu.memory_space<vmem>>, vector<16x128xf32>
      tpu.vector_store %arg8[%c0_22, %c0_23], %23 {strides = array<i32>} : memref<16x128xf32, #tpu.memory_space<vmem>>, vector<16x128xf32>,
    } else {
    }
    %c0 = arith.constant 0 : index
    %c0_1 = arith.constant 0 : index
    %3 = vector.load %arg3[%c0, %c0_1] : memref<16x32xbf16, #tpu.memory_space<vmem>>, vector<16x32xbf16>
    %c0_2 = arith.constant 0 : index
    %c0_3 = arith.constant 0 : index
    %4 = vector.load %arg4[%c0_2, %c0_3] : memref<16x32xbf16, #tpu.memory_space<vmem>>, vector<16x32xbf16>
    %c0_4 = arith.constant 0 : index
    %c0_5 = arith.constant 0 : index
    %5 = vector.load %arg5[%c0_4, %c0_5] : memref<32x128xbf16, #tpu.memory_space<vmem>>, vector<32x128xbf16>
    %c0_6 = arith.constant 0 : index
    %c0_7 = arith.constant 0 : index
    %6 = vector.load %arg6[%c0_6, %c0_7] : memref<32x128xbf16, #tpu.memory_space<vmem>>, vector<32x128xbf16>
    %7 = arith.addf %3, %4 : vector<16x32xbf16>
    %cst = arith.constant dense<0.000000e+00> : vector<16x128xf32>
    %8 = tpu.matmul %7, %5, %cst {dimension_numbers = #tpu.dot_dimension_numbers<[1], [0], [0], [1], [0, 0, 1, 1], [], []>} : vector<16x32xbf16>, vector<32x128xbf16>, vector<16x128xf32> -> vector<16x128xf32>
    %9 = arith.subf %6, %5 : vector<32x128xbf16>
    %cst_8 = arith.constant dense<0.000000e+00> : vector<16x128xf32>
    %10 = tpu.matmul %3, %9, %cst_8 {dimension_numbers = #tpu.dot_dimension_numbers<[1], [0], [0], [1], [0, 0, 1, 1], [], []>} : vector<16x32xbf16>, vector<32x128xbf16>, vector<16x128xf32> -> vector<16x128xf32>
    %11 = arith.addf %6, %5 : vector<32x128xbf16>
    %cst_9 = arith.constant dense<0.000000e+00> : vector<16x128xf32>
    %12 = tpu.matmul %4, %11, %cst_9 {dimension_numbers = #tpu.dot_dimension_numbers<[1], [0], [0], [1], [0, 0, 1, 1], [], []>} : vector<16x32xbf16>, vector<32x128xbf16>, vector<16x128xf32> -> vector<16x128xf32>
    %c0_10 = arith.constant 0 : index
    %c0_11 = arith.constant 0 : index
    %13 = vector.load %arg7[%c0_10, %c0_11] : memref<16x128xf32, #tpu.memory_space<vmem>>, vector<16x128xf32>
    %14 = arith.subf %8, %12 : vector<16x128xf32>
    %15 = arith.addf %13, %14 : vector<16x128xf32>
    %c0_12 = arith.constant 0 : index
    %c0_13 = arith.constant 0 : index
    %16 = vector.load %arg7[%c0_12, %c0_13] : memref<16x128xf32, #tpu.memory_space<vmem>>, vector<16x128xf32>
    tpu.vector_store %arg7[%c0_12, %c0_13], %15 {strides = array<i32>} : memref<16x128xf32, #tpu.memory_space<vmem>>, vector<16x128xf32>,
    %c0_14 = arith.constant 0 : index
    %c0_15 = arith.constant 0 : index
    %17 = vector.load %arg8[%c0_14, %c0_15] : memref<16x128xf32, #tpu.memory_space<vmem>>, vector<16x128xf32>
    %18 = arith.addf %8, %10 : vector<16x128xf32>
    %19 = arith.addf %17, %18 : vector<16x128xf32>
    %c0_16 = arith.constant 0 : index
    %c0_17 = arith.constant 0 : index
    %20 = vector.load %arg8[%c0_16, %c0_17] : memref<16x128xf32, #tpu.memory_space<vmem>>, vector<16x128xf32>
    tpu.vector_store %arg8[%c0_16, %c0_17], %19 {strides = array<i32>} : memref<16x128xf32, #tpu.memory_space<vmem>>, vector<16x128xf32>,
    return
  }
  func.func @transform_0(%arg0: i32, %arg1: i32, %arg2: i32) -> (i32, i32) {
    %c0_i32 = arith.constant 0 : i32
    return %arg0, %arg2 : i32, i32
  }
  func.func @transform_1(%arg0: i32, %arg1: i32, %arg2: i32) -> (i32, i32) {
    %c0_i32 = arith.constant 0 : i32
    return %arg0, %arg2 : i32, i32
  }
  func.func @transform_2(%arg0: i32, %arg1: i32, %arg2: i32) -> (i32, i32) {
    %c0_i32 = arith.constant 0 : i32
    return %arg2, %arg1 : i32, i32
  }
  func.func @transform_3(%arg0: i32, %arg1: i32, %arg2: i32) -> (i32, i32) {
    %c0_i32 = arith.constant 0 : i32
    return %arg2, %arg1 : i32, i32
  }
  func.func @transform_4(%arg0: i32, %arg1: i32, %arg2: i32) -> (i32, i32) {
    %c0_i32 = arith.constant 0 : i32
    return %arg0, %arg1 : i32, i32
  }
  func.func @transform_5(%arg0: i32, %arg1: i32, %arg2: i32) -> (i32, i32) {
    %c0_i32 = arith.constant 0 : i32
    return %arg0, %arg1 : i32, i32
  }
}

</mosaic_0001>

<bundles_post_ra>
// kernel: tpu_custom_call.1
= control target key start
LH: loop header
LB: loop body
LE: loop exit
PB: predicated region body
PF: predicated region fallthrough
CT: control target
= control target key end

     0   :  { %11 = vsyncpa [#allocation3], 0  ;;  %s688_s0 = inlined_call_operand.hbm [shape: bf16[16,32], index: 0, kind: input, shape index: {}]   ;;  %s689_s1 = inlined_call_operand.hbm [shape: bf16[16,32], index: 1, kind: input, shape index: {}]   ;;  %s690_s2 = inlined_call_operand.hbm [shape: bf16[32,128], index: 2, kind: input, shape index: {}]   ;;  %s691_s3 = inlined_call_operand.hbm [shape: bf16[32,128], index: 3, kind: input, shape index: {}]   ;;  %s692_s4 = inlined_call_operand.hbm [shape: f32[16,128], index: 4, kind: output, shape index: {0}]   ;;  %s693_s5 = inlined_call_operand.hbm [shape: f32[16,128], index: 5, kind: output, shape index: {1}]  }
   0x1   :  { %12 = vsyncpa [#allocation6], 0 }
   0x2   :  { %13 = vsyncpa [#allocation9], 0 }
   0x3   :  { %14 = vsyncpa [#allocation4], 0 }
   0x4   :  { %15 = vsyncpa [#allocation12], 0  ;;  %s545_s18 = smov [#allocation5]   ;;  %s546_s20 = smov [#allocation2]  }
   0x5   :  { %s33_s19 = sshll.u32 %s545_s18, 4  ;;  %s21_s21 = sshll.u32 %s546_s20, 4  ;;  %s34_s19 = int_to_ptr.vmem [resolvable:$true] %s33_s19  ;;  %s587_s21 = int_to_ptr.vmem [resolvable:$true] %s21_s21 }
   0x6   :  { %s403_s24 = scalar_lea.hbm %s689_s1, 128 }
   0x7   :  { %p404_p0 = scmp.ne.s32.totalorder %s689_s1, %s403_s24  ;;  %p407_p1 = scmp.lt.u32.totalorder %s403_s24, %s689_s1 }
   0x9   :  { %p409_p2 = pnand %p407_p1, %p404_p0 }
   0xb   :  { %412 = shalt.err (!%p409_p2)
}
   0xc   :  { %s413_s29 = scalar_lea.vmem %s34_s19, 128  ;;  %p418_p4 = scmp.lt.s32.totalorder %s34_s19, %s34_s19 }
   0xd   :  { %p414_p3 = scmp.ne.s32.totalorder %s34_s19, %s413_s29  ;;  %p419_p5 = scmp.lt.s32.totalorder %s413_s29, %s413_s29 }
   0xf   :  { %p420_p6 = por %p419_p5, %p418_p4 }
  0x11   :  { %p421_p7 = pnand %p420_p6, %p414_p3 }
  0x13   :  { %424 = shalt.err (!%p421_p7)
}
  0x14   :  { %s547_s30 = smov 64   ;;  %s548_s6 = smov 4  }
  0x15   :  { %39 = dma.hbm_to_vmem [thread:$0]  %s689_s1, 128, %s34_s19, [#allocation6], %s547_s30, %s547_s30, %s548_s6  }
  0x16   :  { %s425_s11 = scalar_lea.hbm %s688_s0, 128 }
  0x17   :  { %p426_p8 = scmp.ne.s32.totalorder %s688_s0, %s425_s11  ;;  %p429_p9 = scmp.lt.u32.totalorder %s425_s11, %s688_s0 }
  0x19   :  { %p431_p10 = pnand %p429_p9, %p426_p8 }
  0x1b   :  { %434 = shalt.err (!%p431_p10)
}
  0x1c   :  { %s435_s16 = scalar_lea.vmem %s587_s21, 128  ;;  %p440_p12 = scmp.lt.s32.totalorder %s587_s21, %s587_s21 }
  0x1d   :  { %p436_p11 = scmp.ne.s32.totalorder %s587_s21, %s435_s16  ;;  %p441_p13 = scmp.lt.s32.totalorder %s435_s16, %s435_s16 }
  0x1f   :  { %p442_p0 = por %p441_p13, %p440_p12 }
  0x21   :  { %p443_p1 = pnand %p442_p0, %p436_p11 }
  0x23   :  { %446 = shalt.err (!%p443_p1)
}
  0x24   :  { %27 = dma.hbm_to_vmem [thread:$0]  %s688_s0, 128, %s587_s21, [#allocation3], %s547_s30, %s547_s30, %s548_s6  }
  0x25   :  { %s549_s18 = smov [#allocation7]   ;;  %s550_s20 = smov [#allocation8]  }
  0x26   :  { %s45_s19 = sshll.u32 %s549_s18, 4  ;;  %s57_s22 = sshll.u32 %s550_s20, 4  ;;  %s46_s19 = int_to_ptr.vmem [resolvable:$true] %s45_s19  ;;  %s624_s22 = int_to_ptr.vmem [resolvable:$true] %s57_s22 }
  0x27   :  { %s447_s25 = scalar_lea.hbm %s690_s2, 256 }
  0x28   :  { %p448_p2 = scmp.ne.s32.totalorder %s690_s2, %s447_s25  ;;  %p451_p3 = scmp.lt.u32.totalorder %s447_s25, %s690_s2 }
  0x2a   :  { %p453_p4 = pnand %p451_p3, %p448_p2 }
  0x2c   :  { %456 = shalt.err (!%p453_p4)
}
  0x2d   :  { %s457_s0 = scalar_lea.vmem %s46_s19, 256  ;;  %p462_p6 = scmp.lt.s32.totalorder %s46_s19, %s46_s19 }
  0x2e   :  { %p458_p5 = scmp.ne.s32.totalorder %s46_s19, %s457_s0  ;;  %p463_p7 = scmp.lt.s32.totalorder %s457_s0, %s457_s0 }
  0x30   :  { %p464_p8 = por %p463_p7, %p462_p6 }
  0x32   :  { %p465_p9 = pnand %p464_p8, %p458_p5 }
  0x34   :  { %468 = shalt.err (!%p465_p9)
}
  0x35   :  { %51 = dma.hbm_to_vmem [thread:$0]  %s690_s2, 256, %s46_s19, [#allocation6], %s547_s30, %s547_s30, %s548_s6  }
  0x36   :  { %s469_s10 = scalar_lea.hbm %s691_s3, 256 }
  0x37   :  { %p470_p10 = scmp.ne.s32.totalorder %s691_s3, %s469_s10  ;;  %p473_p11 = scmp.lt.u32.totalorder %s469_s10, %s691_s3 }
  0x39   :  { %p475_p12 = pnand %p473_p11, %p470_p10 }
  0x3b   :  { %478 = shalt.err (!%p475_p12)
}
  0x3c   :  { %s479_s15 = scalar_lea.vmem %s624_s22, 256  ;;  %p484_p0 = scmp.lt.s32.totalorder %s624_s22, %s624_s22 }
  0x3d   :  { %p480_p13 = scmp.ne.s32.totalorder %s624_s22, %s479_s15  ;;  %p485_p1 = scmp.lt.s32.totalorder %s479_s15, %s479_s15 }
  0x3f   :  { %p486_p2 = por %p485_p1, %p484_p0 }
  0x41   :  { %p487_p3 = pnand %p486_p2, %p480_p13 }
  0x43   :  { %490 = shalt.err (!%p487_p3)
}
  0x44   :  { %63 = dma.hbm_to_vmem [thread:$0]  %s691_s3, 256, %s624_s22, [#allocation9], %s547_s30, %s547_s30, %s548_s6  }
  0x45   :  { %535 = dma.done.wait [#allocation3], 128  }
  0x46   :  { %536 = vsyncadd [#allocation3], 4294967168 }
  0x47   :  { %537 = dma.done.wait [#allocation6], 384  }
  0x48   :  { %538 = vsyncadd [#allocation6], 4294966912 }
  0x49   :  { %539 = dma.done.wait [#allocation9], 256  }
  0x4a   :  { %540 = vsyncadd [#allocation9], 4294967040  ;;  %v551_v0 = vmov 0.0   ;;  %vm552_vm0 = vmmov 0   ;;  %v89_v1 = vld [vmem:[#allocation7] sm:$0xf] }
  0x4b   :  { %363 = vmatprep.subr.bf16.mxu0 %v551_v0  ;;  %371 = vmatprep.subr.bf16.mxu1 %v551_v0  ;;  %v90_v2 = vld [vmem:[#allocation7 + $0x4] sm:$0xf]  ;;  %v93_v3 = vld [vmem:[#allocation8] sm:$0xf]  ;;  %v94_v5 = vld [vmem:[#allocation8 + $0x4] sm:$0xf] }
  0x4c   :  { %367 = vmatprep.mubr.msk.bf16.mxu0 %vm552_vm0, %v551_v0  ;;  %375 = vmatprep.mubr.msk.bf16.mxu1 %vm552_vm0, %v551_v0  ;;  %v343_v4 = vcombine.low %v89_v1, %v90_v2  ;;  %v161_v6 = vsub.bf16 %v93_v3, %v89_v1  ;;  %v91_v7 = vld [vmem:[#allocation7 + $0x8] sm:$0xf]  ;;  %v92_v8 = vld [vmem:[#allocation7 + $0xc] sm:$0xf]  ;;  %v162_v9 = vsub.bf16 %v94_v5, %v90_v2  ;;  %v95_v11 = vld [vmem:[#allocation8 + $0x8] sm:$0xf] }
  0x4d   :  { %v226_v10 = vadd.bf16 %v93_v3, %v89_v1  ;;  %v96_v12 = vld [vmem:[#allocation8 + $0xc] sm:$0xf]  ;;  %v85_v13 = vld [vmem:[#allocation2] sm:$0xf]  ;;  %v227_v14 = vadd.bf16 %v94_v5, %v90_v2  ;;  %v344_v15 = vcombine.low %v91_v7, %v92_v8  ;;  %v163_v16 = vsub.bf16 %v95_v11, %v91_v7  ;;  %v86_v18 = vld [vmem:[#allocation2 + $0x4] sm:$0xf] }
  0x4e   :  { %364 = vmatpush3.bf16.msra.mxu0 %v343_v4  ;;  %v164_v17 = vsub.bf16 %v96_v12, %v92_v8  ;;  %v87_v19 = vld [vmem:[#allocation5] sm:$0xf]  ;;  %v88_v20 = vld [vmem:[#allocation5 + $0x4] sm:$0xf]  ;;  %v347_v21 = vcombine.low %v161_v6, %v162_v9  ;;  %v228_v26 = vadd.bf16 %v95_v11, %v91_v7  ;;  %v229_v27 = vadd.bf16 %v96_v12, %v92_v8  ;;  %s553_s3 = smov [#allocation11]   ;;  %s554_s6 = smov [#allocation10]  }
  0x4f   :  { %365 = vmatprep.subr.bf16.mxu0 %v551_v0  ;;  %v97_v22 = vadd.bf16 %v87_v19, %v85_v13  ;;  %v98_v23 = vadd.bf16 %v88_v20, %v86_v18  ;;  %vm116_vm1 = vcmask 261120   ;;  %v351_v28 = vcombine.low %v226_v10, %v227_v14  ;;  %s324_s30 = sshll.u32 %s553_s3, 4  ;;  %s312_s1 = sshll.u32 %s554_s6, 4  ;;  %s325_s30 = int_to_ptr.vmem [resolvable:$true] %s324_s30  ;;  %s313_s1 = int_to_ptr.vmem [resolvable:$true] %s312_s1 }
  0x50   :  { %372 = vmatpush3.bf16.msra.mxu1 %v347_v21  ;;  %v348_v24 = vcombine.low %v163_v16, %v164_v17  ;;  %v346_v29 = vcombine.low %v85_v13, %v86_v18  ;;  %v352_v30 = vcombine.low %v228_v26, %v229_v27  ;;  %v350_v31 = vcombine.low %v87_v19, %v88_v20  ;;  %s491_s17 = scalar_lea.vmem %s325_s30, 256  ;;  %p496_p5 = scmp.lt.s32.totalorder %s325_s30, %s325_s30 }
  0x51   :  { %v342_v25 = vcombine.low %v97_v22, %v98_v23  ;;  %373 = vmatprep.subr.bf16.mxu1 %v551_v0  ;;  %p492_p4 = scmp.ne.s32.totalorder %s325_s30, %s491_s17  ;;  %p497_p6 = scmp.lt.s32.totalorder %s491_s17, %s491_s17 }
  0x52   :  { %366 = vmatpush3.bf16.msra.mxu0 %v344_v15 }
  0x53   :  { %379 = vmatprep.subr.bf16.mxu0 %v551_v0  ;;  %p498_p7 = por %p497_p6, %p496_p5 }
  0x54   :  { %374 = vmatpush3.bf16.msra.mxu1 %v348_v24 }
  0x55   :  { %368 = vmatmul.mubr.msk.bf16.vlgmr.msra.gmra.mrb[0].mxu0 %vm116_vm1, %v342_v25  ;;  %p499_p8 = pnand %p498_p7, %p492_p4 }
  0x56   :  { %380 = vmatpush3.bf16.msra.mxu0 %v351_v28  ;;  %383 = vmatprep.mubr.msk.bf16.mxu0 %vm552_vm0, %v551_v0 }
  0x57   :  { %381 = vmatprep.subr.bf16.mxu0 %v551_v0  ;;  %376 = vmatmul.mubr.msk.bf16.vlgmr.msra.gmra.mrb[0].mxu1 %vm116_vm1, %v346_v29 }
  0x5a   :  { %382 = vmatpush3.bf16.msra.mxu0 %v352_v30 }
  0x5d   :  { %384 = vmatmul.mubr.msk.bf16.vlgmr.msra.gmra.mrb[4].mxu0 %vm116_vm1, %v350_v31 }
 0x128   :  { %v154_v32 = vpop.f32.mrb[0].mxu0 }
 0x129   :  { %v369_v33 = vpop.f32.mrb[1].mxu0 }
 0x12a   :  { %v157_v34 = vpop.f32.mrb[2].mxu0  ;;  %v219_v35 = vpop.f32.mrb[0].mxu1 }
 0x12b   :  { %v370_v36 = vpop.f32.mrb[3].mxu0  ;;  %v301_v37 = vadd.f32 %v219_v35, %v154_v32  ;;  %v377_v38 = vpop.f32.mrb[1].mxu1 }
 0x12c   :  { %v222_v39 = vpop.f32.mrb[2].mxu1 }
 0x12d   :  { %v302_v40 = vadd.f32 %v222_v39, %v157_v34  ;;  %v378_v41 = vpop.f32.mrb[3].mxu1  ;;  %305 = vst [vmem:[#allocation11] sm:$0xff] %v301_v37 }
 0x12f   :  { %306 = vst [vmem:[#allocation11 + $0x8] sm:$0xff] %v302_v40 }
 0x130   :  { %v284_v42 = vpop.f32.mrb[4].mxu0 }
 0x131   :  { %v293_v43 = vsub.f32 %v154_v32, %v284_v42  ;;  %v385_v44 = vpop.f32.mrb[5].mxu0 }
 0x132   :  { %v287_v45 = vpop.f32.mrb[6].mxu0 }
 0x133   :  { %v294_v46 = vsub.f32 %v157_v34, %v287_v45  ;;  %v386_v47 = vpop.f32.mrb[7].mxu0 }
 0x134   :  { %502 = shalt.err (!%p499_p8)
}
 0x135   :  { %s503_s20 = scalar_lea.hbm %s693_s5, 256 }
 0x136   :  { %p504_p9 = scmp.ne.s32.totalorder %s693_s5, %s503_s20  ;;  %p507_p10 = scmp.lt.u32.totalorder %s503_s20, %s693_s5 }
 0x138   :  { %p509_p11 = pnand %p507_p10, %p504_p9 }
 0x13a   :  { %512 = shalt.err (!%p509_p11)
}
 0x13b   :  { %s555_s26 = smov 128   ;;  %s556_s27 = smov 8   ;;  %297 = vst [vmem:[#allocation10] sm:$0xff] %v293_v43  ;;  %298 = vst [vmem:[#allocation10 + $0x8] sm:$0xff] %v294_v46 }
 0x13c   :  { %330 = dma.vmem_to_hbm [thread:$0]  %s325_s30, 256, %s693_s5, [#allocation12], %s555_s26, %s555_s26, %s556_s27  }
 0x13d   :  { %s513_s0 = scalar_lea.vmem %s313_s1, 256  ;;  %p518_p13 = scmp.lt.s32.totalorder %s313_s1, %s313_s1 }
 0x13e   :  { %p514_p12 = scmp.ne.s32.totalorder %s313_s1, %s513_s0  ;;  %p519_p0 = scmp.lt.s32.totalorder %s513_s0, %s513_s0 }
 0x140   :  { %p520_p1 = por %p519_p0, %p518_p13 }
 0x142   :  { %p521_p2 = pnand %p520_p1, %p514_p12 }
 0x144   :  { %524 = shalt.err (!%p521_p2)
}
 0x145   :  { %s525_s8 = scalar_lea.hbm %s692_s4, 256 }
 0x146   :  { %p526_p3 = scmp.ne.s32.totalorder %s692_s4, %s525_s8  ;;  %p529_p4 = scmp.lt.u32.totalorder %s525_s8, %s692_s4 }
 0x148   :  { %p531_p5 = pnand %p529_p4, %p526_p3 }
 0x14a   :  { %534 = shalt.err (!%p531_p5)
}
 0x14b   :  { %318 = dma.vmem_to_hbm [thread:$0]  %s313_s1, 256, %s692_s4, [#allocation4], %s555_s26, %s555_s26, %s556_s27  }
 0x14c   :  { %541 = dma.done.wait [#allocation4], 256  }
 0x14d   :  { %542 = vsyncadd [#allocation4], 4294967040 }
 0x14e   :  { %543 = dma.done.wait [#allocation12], 256  }
 0x14f   :  { %544 = vsyncadd [#allocation12], 4294967040 }
 0x150   :  { %337 = vsyncpa [#allocation3], 1 }
 0x151   :  { %338 = vsyncpa [#allocation6], 1 }
 0x152   :  { %339 = vsyncpa [#allocation9], 1 }
 0x153   :  { %340 = vsyncpa [#allocation4], 1 }
 0x154   :  { %341 = vsyncpa [#allocation12], 1 }

</bundles_post_ra>
